<compile_context>
chip_gen: v7x
topology: tpu7x:2x2x1
jax: 0.10.0
libtpu: 0.0.40
codegen_flags: <defaults>
</compile_context>

<pallas_src>
import jax
import jax.numpy as jnp
from jax.experimental import pallas as pl
from jax.experimental.pallas import tpu as pltpu


# ----------------------------------------------------------------------------
# Kernel: per-batch-tile work only (matmul -> softmax -> matmul -> normalize)
# ----------------------------------------------------------------------------
def stl_kernel(x_ref, m_ref, vg_ref, out_ref):
    E = out_ref.shape[1]

    x = x_ref[...]      # [bn, d_q]   bf16
    M = m_ref[...]      # [d_q, H*T]  bf16  (folded Q projection, pre-scaled)
    VG = vg_ref[...]    # [H*T, 2E]   bf16  (block-diag V | per-head group sum)

    # Scores for every head packed along the lane axis: ONE MXU call,
    # bf16 inputs, f32 accumulation.
    s = jnp.dot(x, M, preferred_element_type=jnp.float32)        # [bn, H*T]
    # Global row max is constant within each head's column segment, so
    # subtracting it leaves every per-head softmax unchanged (exp <= 1).
    s = s - jnp.max(s, axis=-1, keepdims=True)
    p = jnp.exp(s)                                                # f32 (EUP)

    # ONE matmul yields both the unnormalized per-head outputs (first E lanes)
    # and the per-head softmax denominators broadcast to the output column
    # layout (last E lanes).
    r = jnp.dot(p.astype(jnp.bfloat16), VG,
                preferred_element_type=jnp.float32)               # [bn, 2E]
    num = r[:, :E]
    # Clamp: a head whose scores all underflow must not feed 0 into the
    # approximate reciprocal (inf/NaN guard).
    den = jnp.maximum(r[:, E:], 1e-20)
    out = num * pl.reciprocal(den, approx=True)                   # [bn, E]

    # Single full-width store of the output tile.
    out_ref[...] = out.astype(out_ref.dtype)


# ----------------------------------------------------------------------------
# Wrapper: hoisted prework + pallas_call
# ----------------------------------------------------------------------------
def _round_up(x, m):
    return ((x + m - 1) // m) * m


def _choose_bn(N, block_n):
    """Batch tile size: multiple of 8 (or == N), >=2 grid steps for large N."""
    if N <= 8:
        return N                       # tiny batch: one full-extent tile
    # At least 2 grid steps so v7x's two TensorCores both get work when the
    # batch axis is megacore-sharded; capped at block_n for pipelining.
    bn = min(block_n, _round_up(pl.cdiv(N, 2), 8))
    return max(bn, 8)


def stl_forward(inputs, embed, wq, wk, wv, *, num_heads, block_n=4096):
    N, d_q = inputs.shape
    T, d_k = embed.shape
    E = wq.shape[1]
    split = E // num_heads
    HT = num_heads * T
    scale = 1.0 / (float(d_k) ** 0.5)

    # ---------------- batch-independent prework (runs once) ----------------
    keys = jnp.tanh(embed)                                        # [T, d_k]
    k = keys @ wk                                                 # [T, E]
    v = keys @ wv                                                 # [T, E]

    # Block-diagonal per-head packing built with a single iota mask
    # (row r of the [H*T, E] layout = head r // T, token r % T).
    col_head = jnp.arange(E) // split                             # [E]
    row_head = jnp.repeat(jnp.arange(num_heads), T)               # [H*T]
    sel = row_head[:, None] == col_head[None, :]                  # [H*T, E]
    Kb = jnp.where(sel, jnp.tile(k, (num_heads, 1)), 0.0)         # [H*T, E]
    Vb = jnp.where(sel, jnp.tile(v, (num_heads, 1)), 0.0)         # [H*T, E]
    G = sel.astype(jnp.float32)                                   # [H*T, E]
    VG = jnp.concatenate([Vb, G], axis=1)                         # [H*T, 2E]

    # Fold the Q projection into a batch-independent matrix, scale included:
    #   s = (x @ wq) @ Kb^T / sqrt(d_k) = x @ M
    M = (wq @ Kb.T) * scale                                       # [d_q, H*T]

    # bf16 MXU operands (f32 accumulation happens inside the kernel).
    x_bf = inputs.astype(jnp.bfloat16)
    M_bf = M.astype(jnp.bfloat16)
    VG_bf = VG.astype(jnp.bfloat16)

    # ---------------- batch-tiled pallas_call ----------------
    bn = _choose_bn(N, block_n)
    grid = (pl.cdiv(N, bn),)

    out = pl.pallas_call(
        stl_kernel,
        out_shape=jax.ShapeDtypeStruct((N, E), jnp.float32),
        grid=grid,
        in_specs=[
            pl.BlockSpec((bn, d_q), lambda i: (i, 0)),        # batch-tiled
            pl.BlockSpec((d_q, HT), lambda i: (0, 0)),        # grid-invariant
            pl.BlockSpec((HT, 2 * E), lambda i: (0, 0)),      # grid-invariant
        ],
        out_specs=pl.BlockSpec((bn, E), lambda i: (i, 0)),
        compiler_params=pltpu.CompilerParams(
            dimension_semantics=("parallel",)),
    )(x_bf, M_bf, VG_bf)

    # PyTorch STL returns [N, T_q=1, E]
    return out[:, None, :]


# ----------------------------------------------------------------------------
# Pure-JAX reference reproducing the PyTorch semantics exactly (f32 end-to-end)
# ----------------------------------------------------------------------------
def stl_reference(inputs, embed, wq, wk, wv, *, num_heads):
    N, d_q = inputs.shape
    T, d_k = embed.shape
    E = wq.shape[1]

    query = inputs[:, None, :]                          # [N, 1, d_q]
    keys = jnp.tanh(embed)[None].repeat(N, axis=0)      # [N, T, d_k]

    querys = query @ wq                                 # [N, 1, E]
    keys_p = keys @ wk                                  # [N, T, E]
    values = keys @ wv                                  # [N, T, E]

    def to_heads(x):  # [N, L, E] -> [h, N, L, split]
        return jnp.stack(jnp.split(x, num_heads, axis=2), axis=0)

    qh, kh, vh = to_heads(querys), to_heads(keys_p), to_heads(values)
    scores = qh @ jnp.swapaxes(kh, 2, 3) / (d_k ** 0.5)  # [h, N, 1, T]
    scores = jax.nn.softmax(scores, axis=3)
    out = scores @ vh                                    # [h, N, 1, split]
    out = jnp.concatenate(jnp.split(out, num_heads, axis=0), axis=3)[0]
    return out                                           # [N, 1, E]


if __name__ == "__main__":
    # hparams: token_num=10, E=32, num_heads=4  ->  d_q=16, d_k=8
    token_num, E, num_heads = 10, 32, 4
    d_q = E // 2
    d_k = E // num_heads
    N = 2

    key = jax.random.PRNGKey(0)
    k_in, k_emb, k_q, k_k, k_v = jax.random.split(key, 5)

    inputs = jax.random.normal(k_in, (N, d_q), dtype=jnp.float32)
    # init.normal_(embed, mean=0, std=0.5)
    embed = 0.5 * jax.random.normal(k_emb, (token_num, d_k), dtype=jnp.float32)
    # Linear weights (bias=False), stored as [in_features, out_features]
    wq = 0.1 * jax.random.normal(k_q, (d_q, E), dtype=jnp.float32)
    wk = 0.1 * jax.random.normal(k_k, (d_k, E), dtype=jnp.float32)
    wv = 0.1 * jax.random.normal(k_v, (d_k, E), dtype=jnp.float32)

    out = stl_forward(inputs, embed, wq, wk, wv, num_heads=num_heads)
    out = jax.block_until_ready(out)

    ref = stl_reference(inputs, embed, wq, wk, wv, num_heads=num_heads)
    assert out.shape == (N, 1, E), out.shape
    # Tolerance accounts for bf16 MXU operands (f32 accumulation) and the EUP
    # approximate reciprocal used for the softmax normalization; both are
    # exact in math, ~1e-3-level in practice against the f32 reference.
    assert jnp.allclose(out, ref, atol=5e-3, rtol=5e-3), \
        f"max abs err {jnp.max(jnp.abs(out - ref))}"

    print("KERNEL_OK")
</pallas_src>

<mosaic_0001>
module attributes {stable_mosaic.version = 11 : i64} {
  func.func @stl_kernel(%arg0: i32, %arg1: memref<2x16xbf16, #tpu.memory_space<vmem>>, %arg2: memref<16x40xbf16, #tpu.memory_space<vmem>>, %arg3: memref<40x64xbf16, #tpu.memory_space<vmem>>, %arg4: memref<2x32xf32, #tpu.memory_space<vmem>>) attributes {dimension_semantics = [#tpu.dimension_semantics<parallel>], iteration_bounds = array<i64: 1>, scalar_prefetch = 0 : i64, scratch_operands = 0 : i64, tpu.core_type = #tpu.core_type<tc>, window_params = [{transform_indices = @transform_0, window_bounds = array<i64: 2, 16>}, {pipeline_mode = #tpu.pipeline_mode<synchronous>, transform_indices = @transform_1, window_bounds = array<i64: 16, 40>}, {pipeline_mode = #tpu.pipeline_mode<synchronous>, transform_indices = @transform_2, window_bounds = array<i64: 40, 64>}, {transform_indices = @transform_3, window_bounds = array<i64: 2, 32>}]} {
    %c0 = arith.constant 0 : index
    %c0_0 = arith.constant 0 : index
    %0 = vector.load %arg1[%c0, %c0_0] : memref<2x16xbf16, #tpu.memory_space<vmem>>, vector<2x16xbf16>
    %c0_1 = arith.constant 0 : index
    %c0_2 = arith.constant 0 : index
    %1 = vector.load %arg2[%c0_1, %c0_2] : memref<16x40xbf16, #tpu.memory_space<vmem>>, vector<16x40xbf16>
    %c0_3 = arith.constant 0 : index
    %c0_4 = arith.constant 0 : index
    %2 = vector.load %arg3[%c0_3, %c0_4] : memref<40x64xbf16, #tpu.memory_space<vmem>>, vector<40x64xbf16>
    %cst = arith.constant dense<0.000000e+00> : vector<2x40xf32>
    %3 = tpu.matmul %0, %1, %cst {dimension_numbers = #tpu.dot_dimension_numbers<[1], [0], [0], [1], [0, 0, 1, 1], [], []>} : vector<2x16xbf16>, vector<16x40xbf16>, vector<2x40xf32> -> vector<2x40xf32>
    %cst_5 = arith.constant dense<0xFF800000> : vector<2xf32>
    %4 = vector.multi_reduction <maximumf>, %3, %cst_5 [1] : vector<2x40xf32> to vector<2xf32>
    %5 = vector.shape_cast %4 : vector<2xf32> to vector<2x1xf32>
    %6 = vector.broadcast %5 : vector<2x1xf32> to vector<2x40xf32>
    %7 = arith.subf %3, %6 : vector<2x40xf32>
    %8 = math.exp %7 : vector<2x40xf32>
    %9 = arith.truncf %8 : vector<2x40xf32> to vector<2x40xbf16>
    %cst_6 = arith.constant dense<0.000000e+00> : vector<2x64xf32>
    %10 = tpu.matmul %9, %2, %cst_6 {dimension_numbers = #tpu.dot_dimension_numbers<[1], [0], [0], [1], [0, 0, 1, 1], [], []>} : vector<2x40xbf16>, vector<40x64xbf16>, vector<2x64xf32> -> vector<2x64xf32>
    %11 = vector.extract_strided_slice %10 {offsets = [0, 0], sizes = [2, 32], strides = [1, 1]} : vector<2x64xf32> to vector<2x32xf32>
    %12 = vector.extract_strided_slice %10 {offsets = [0, 32], sizes = [2, 32], strides = [1, 1]} : vector<2x64xf32> to vector<2x32xf32>
    %cst_7 = arith.constant 9.99999968E-21 : f32
    %13 = vector.broadcast %cst_7 : f32 to vector<2x32xf32>
    %14 = arith.maximumf %12, %13 : vector<2x32xf32>
    %15 = tpu.reciprocal %14 {approx = true} : vector<2x32xf32> -> vector<2x32xf32>
    %16 = arith.mulf %11, %15 : vector<2x32xf32>
    %c0_8 = arith.constant 0 : index
    %c0_9 = arith.constant 0 : index
    %17 = vector.load %arg4[%c0_8, %c0_9] : memref<2x32xf32, #tpu.memory_space<vmem>>, vector<2x32xf32>
    tpu.vector_store %arg4[%c0_8, %c0_9], %16 {strides = array<i32>} : memref<2x32xf32, #tpu.memory_space<vmem>>, vector<2x32xf32>,
    return
  }
  func.func @transform_0(%arg0: i32) -> (i32, i32) {
    %c0_i32 = arith.constant 0 : i32
    %c0_i32_0 = arith.constant 0 : i32
    return %arg0, %c0_i32 : i32, i32
  }
  func.func @transform_1(%arg0: i32) -> (i32, i32) {
    %c0_i32 = arith.constant 0 : i32
    %c0_i32_0 = arith.constant 0 : i32
    %c0_i32_1 = arith.constant 0 : i32
    return %c0_i32, %c0_i32_0 : i32, i32
  }
  func.func @transform_2(%arg0: i32) -> (i32, i32) {
    %c0_i32 = arith.constant 0 : i32
    %c0_i32_0 = arith.constant 0 : i32
    %c0_i32_1 = arith.constant 0 : i32
    return %c0_i32, %c0_i32_0 : i32, i32
  }
  func.func @transform_3(%arg0: i32) -> (i32, i32) {
    %c0_i32 = arith.constant 0 : i32
    %c0_i32_0 = arith.constant 0 : i32
    return %arg0, %c0_i32 : i32, i32
  }
}

</mosaic_0001>

<bundles_post_ra>
// kernel: tpu_custom_call.1
= control target key start
LH: loop header
LB: loop body
LE: loop exit
PB: predicated region body
PF: predicated region fallthrough
CT: control target
= control target key end

     0   :  { %8 = vsyncpa [#allocation3], 0  ;;  %s431_s0 = inlined_call_operand.hbm [shape: bf16[2,16], index: 0, kind: input, shape index: {}]   ;;  %s432_s1 = inlined_call_operand.hbm [shape: bf16[16,40], index: 1, kind: input, shape index: {}]   ;;  %s433_s2 = inlined_call_operand.hbm [shape: bf16[40,64], index: 2, kind: input, shape index: {}]   ;;  %s434_s3 = inlined_call_operand.hbm [shape: f32[2,32], index: 3, kind: output, shape index: {}]  }
   0x1   :  { %9 = vsyncpa [#allocation6], 0 }
   0x2   :  { %10 = vsyncpa [#allocation4], 0  ;;  %s348_s12 = smov [#allocation5]   ;;  %s254_s16 = scalar_lea.hbm %s432_s1, 128 }
   0x3   :  { %s26_s13 = sshll.u32 %s348_s12, 4  ;;  %p255_p0 = scmp.ne.s32.totalorder %s432_s1, %s254_s16  ;;  %s27_s13 = int_to_ptr.vmem [resolvable:$true] %s26_s13 }
   0x4   :  { %p258_p1 = scmp.lt.u32.totalorder %s254_s16, %s432_s1 }
   0x6   :  { %p260_p2 = pnand %p258_p1, %p255_p0 }
   0x8   :  { %263 = shalt.err (!%p260_p2)
}
   0x9   :  { %s264_s21 = scalar_lea.vmem %s27_s13, 128  ;;  %p269_p4 = scmp.lt.s32.totalorder %s27_s13, %s27_s13 }
   0xa   :  { %p265_p3 = scmp.ne.s32.totalorder %s27_s13, %s264_s21  ;;  %p270_p5 = scmp.lt.s32.totalorder %s264_s21, %s264_s21 }
   0xc   :  { %p271_p6 = por %p270_p5, %p269_p4 }
   0xe   :  { %p272_p7 = pnand %p271_p6, %p265_p3 }
  0x10   :  { %275 = shalt.err (!%p272_p7)
}
  0x11   :  { %s349_s22 = smov 64   ;;  %s350_s23 = smov 4  }
  0x12   :  { %32 = dma.hbm_to_vmem [thread:$0]  %s432_s1, 128, %s27_s13, [#allocation6], %s349_s22, %s349_s22, %s350_s23  }
  0x13   :  { %s351_s26 = smov [#allocation2]   ;;  %s352_s28 = smov [#allocation7]  }
  0x14   :  { %s17_s27 = sshll.u32 %s351_s26, 4  ;;  %s38_s29 = sshll.u32 %s352_s28, 4  ;;  %s18_s27 = int_to_ptr.vmem [resolvable:$true] %s17_s27  ;;  %s39_s29 = int_to_ptr.vmem [resolvable:$true] %s38_s29 }
  0x15   :  { %s276_s5 = scalar_lea.hbm %s431_s0, 16 }
  0x16   :  { %p277_p8 = scmp.ne.s32.totalorder %s431_s0, %s276_s5  ;;  %p280_p9 = scmp.lt.u32.totalorder %s276_s5, %s431_s0 }
  0x18   :  { %p282_p10 = pnand %p280_p9, %p277_p8 }
  0x1a   :  { %285 = shalt.err (!%p282_p10)
}
  0x1b   :  { %s286_s1 = scalar_lea.vmem %s18_s27, 16  ;;  %s290_s10 = scalar_lea.vmem %s18_s27, 32 }
  0x1c   :  { %p287_p11 = scmp.ne.s32.totalorder %s18_s27, %s286_s1  ;;  %p291_p12 = scmp.lt.s32.totalorder %s18_s27, %s18_s27 }
  0x1d   :  { %p292_p13 = scmp.lt.s32.totalorder %s290_s10, %s286_s1 }
  0x1f   :  { %p293_p0 = por %p292_p13, %p291_p12 }
  0x21   :  { %p294_p1 = pnand %p293_p0, %p287_p11 }
  0x23   :  { %297 = shalt.err (!%p294_p1)
}
  0x24   :  { %20 = dma.hbm_to_vmem [thread:$0]  %s431_s0, 16, %s18_s27, [#allocation3]  }
  0x25   :  { %s298_s15 = scalar_lea.hbm %s433_s2, 320 }
  0x26   :  { %p299_p2 = scmp.ne.s32.totalorder %s433_s2, %s298_s15  ;;  %p302_p3 = scmp.lt.u32.totalorder %s298_s15, %s433_s2 }
  0x28   :  { %p304_p4 = pnand %p302_p3, %p299_p2 }
  0x2a   :  { %307 = shalt.err (!%p304_p4)
}
  0x2b   :  { %s308_s20 = scalar_lea.vmem %s39_s29, 320  ;;  %p313_p6 = scmp.lt.s32.totalorder %s39_s29, %s39_s29 }
  0x2c   :  { %p309_p5 = scmp.ne.s32.totalorder %s39_s29, %s308_s20  ;;  %p314_p7 = scmp.lt.s32.totalorder %s308_s20, %s308_s20 }
  0x2e   :  { %p315_p8 = por %p314_p7, %p313_p6 }
  0x30   :  { %p316_p9 = pnand %p315_p8, %p309_p5 }
  0x32   :  { %319 = shalt.err (!%p316_p9)
}
  0x33   :  { %44 = dma.hbm_to_vmem [thread:$0]  %s433_s2, 320, %s39_s29, [#allocation6], %s349_s22, %s349_s22, %s350_s23  }
  0x34   :  { %342 = dma.done.wait [#allocation3], 16  }
  0x35   :  { %343 = vsyncadd [#allocation3], 4294967280 }
  0x36   :  { %344 = dma.done.wait [#allocation6], 448  }
  0x37   :  { %345 = vsyncadd [#allocation6], 4294966848  ;;  %v353_v0 = vmov 0.0   ;;  %vm354_vm0 = vmmov 0   ;;  %v246_v1 = vld [vmem:[#allocation5] sm:$0xff]   ;;  %vm69_vm1 = vcmask 130048  }
  0x38   :  { %221 = vmatprep.subr.bf16.mxu0 %v353_v0  ;;  %223 = vmatprep.mubr.msk.bf16.mxu0 %vm354_vm0, %v353_v0  ;;  %v55_v2 = vld [vmem:[#allocation2] sm:$0x1]  ;;  %vm113_vm2 = vcmask 320512   ;;  %v247_v8 = vld [vmem:[#allocation7] sm:$0xff]   ;;  %v248_v9 = vld [vmem:[#allocation7 + $0x8] sm:$0xff]   ;;  %vm140_vm3 = vcmask 1043456  }
  0x39   :  { %227 = vmatprep.subr.bf16.mxu1 %v353_v0  ;;  %233 = vmatprep.mubr.msk.bf16.mxu1 %vm354_vm0, %v353_v0  ;;  %v249_v10 = vld [vmem:[#allocation7 + $0x10] ss:$0 sps:$4 sm:$0xff]   ;;  %vm136_vm4 = vcmask 326656   ;;  %s355_s2 = smov 96   ;;  %s356_s22 = smov [#allocation8]   ;;  %vm191_vm5 = vcmask 254976  }
  0x3a   :  { %222 = vmatpush3.bf16.msra.mxu0 %v246_v1  ;;  %228 = vmatpush3.bf16.msra.mxu1 %v247_v8  ;;  %v142_v11 = vsel %vm140_vm3, %v249_v10, 0  ;;  %s199_s23 = sshll.u32 %s356_s22, 4  ;;  %s200_s23 = int_to_ptr.vmem [resolvable:$true] %s199_s23 }
  0x3b   :  { %229 = vmatprep.subr.bf16.mxu1 %v353_v0  ;;  %s320_s24 = scalar_lea.vmem %s200_s23, 32  ;;  %p325_p11 = scmp.lt.s32.totalorder %s200_s23, %s200_s23 }
  0x3c   :  { %p321_p10 = scmp.ne.s32.totalorder %s200_s23, %s320_s24  ;;  %p326_p12 = scmp.lt.s32.totalorder %s320_s24, %s320_s24 }
  0x3d   :  { %224 = vmatmul.mubr.msk.bf16.vlgmr.msra.gmra.mrb[0].mxu0 %vm69_vm1, %v55_v2 }
  0x3e   :  { %230 = vmatpush3.bf16.msra.mxu1 %v248_v9  ;;  %p327_p13 = por %p326_p12, %p325_p11 }
  0x3f   :  { %231 = vmatprep.subr.bf16.mxu1 %v353_v0 }
  0x40   :  { %p328_p0 = pnand %p327_p13, %p321_p10 }
  0x42   :  { %232 = vmatpush3.bf16.msra.mxu1 %v142_v11 }
 0x110   :  { %v107_v3 = vpop.f32.mrb[0].mxu0 }
 0x111   :  { %v225_v4 = vpop.f32.mrb[1].mxu0  ;;  %v114_v5 = vsel %vm113_vm2, %v107_v3, -inf }
 0x112   :  { %115 = vmax.xlane.f32.xlu0 %v114_v5  ;;  %v110_v6 = vpop.f32.mrb[2].mxu0 }
 0x113   :  { %v226_v7 = vpop.f32.mrb[3].mxu0 }
 0x19f   :  { %v116_v12 = vpop.xlane.xlu0 %115 }
 0x1a0   :  { %v117_v13 = vsub.f32 %v107_v3, %v116_v12 }
 0x1a2   :  { %v118_v14 = vmul.f32 1.442695, %v117_v13 }
 0x1a4   :  { %250 = vpow2.f32 %v118_v14 }
 0x1ae   :  { %v251_v15 = vpop.eup %250 }
 0x1af   :  { %v120_v16 = vpack.c.bf16 %v251_v15, %v251_v15 }
 0x1b1   :  { %234 = vmatmul.mubr.msk.bf16.vlgmr.msra.gmra.mrb[0].mxu1 %vm136_vm4, %v120_v16 }
 0x284   :  { %v178_v17 = vpop.f32.mrb[0].mxu1 }
 0x285   :  { %v184_v18 = vmax.f32 %v178_v17, 1e-20  ;;  %v235_v19 = vpop.f32.mrb[1].mxu1 }
 0x286   :  { %v181_v20 = vpop.f32.mrb[2].mxu1 }
 0x287   :  { %252 = vrcp.f32 %v184_v18  ;;  %v236_v21 = vpop.f32.mrb[3].mxu1 }
 0x291   :  { %v253_v22 = vpop.eup %252 }
 0x292   :  { %187 = vrot.lane.b32.xlu0 %v253_v22, %s355_s2 }
 0x304   :  { %v188_v23 = vpop.permute.xlu0 %187 }
 0x305   :  { %v190_v24 = vmul.f32 %v188_v23, %v178_v17 }
 0x307   :  { %192 = vst.msk [vmem:[#allocation8] sm:$0x3] %vm191_vm5, %v190_v24 }
 0x308   :  { %331 = shalt.err (!%p328_p0)
}
 0x309   :  { %s332_s27 = scalar_lea.hbm %s434_s3, 32 }
 0x30a   :  { %p333_p1 = scmp.ne.s32.totalorder %s434_s3, %s332_s27  ;;  %p336_p2 = scmp.lt.u32.totalorder %s332_s27, %s434_s3 }
 0x30c   :  { %p338_p3 = pnand %p336_p2, %p333_p1 }
 0x30e   :  { %341 = shalt.err (!%p338_p3)
}
 0x30f   :  { %202 = dma.vmem_to_hbm [thread:$0]  %s200_s23, 32, %s434_s3, [#allocation4]  }
 0x310   :  { %346 = dma.done.wait [#allocation4], 32  }
 0x311   :  { %347 = vsyncadd [#allocation4], 4294967264 }
 0x312   :  { %206 = vsyncpa [#allocation3], 1 }
 0x313   :  { %207 = vsyncpa [#allocation6], 1 }
 0x314   :  { %208 = vsyncpa [#allocation4], 1 }

</bundles_post_ra>
